<compile_context>
chip_gen: v7x
topology: tpu7x:2x2x1
jax: 0.10.0
libtpu: 0.0.40
codegen_flags: <defaults>
</compile_context>

<pallas_src>
import jax
import jax.numpy as jnp
from jax.experimental import pallas as pl
from jax.experimental.pallas import tpu as pltpu


def temporal_encoder_kernel(x_ref, emb_ref, ws_ref, bs_ref, we_ref, be_ref, o_ref):
    # x_ref:   (1, T, tn, F)  float32   raw stock block (batch b, stock tile j)
    # emb_ref: (tn, E)        bfloat16  embedding rows for this stock tile
    # ws_ref:  (T, F, D)      bfloat16  stock_encoder.weight.T reshaped
    # bs_ref:  (1, D)         float32
    # we_ref:  (E, D)         bfloat16  embed_encoder.weight.T
    # be_ref:  (1, D)         float32
    # o_ref:   (1, tn, D)     float32
    T = x_ref.shape[1]
    tn = x_ref.shape[2]
    D = o_ref.shape[-1]

    # stock path:  s[n, d] = sum_{t, f} stock[t, n, f] * Ws[t*F + f, d]
    # (this *is* permute(0,2,1,3).reshape(..., T*F) @ Ws, done as T MXU passes
    #  so no transposed copy of `stock` is ever written to HBM)
    s = jnp.zeros((tn, D), jnp.float32)
    for t in range(T):  # T is small (e.g. 8); static unroll
        s = s + jnp.dot(
            x_ref[0, t].astype(jnp.bfloat16),
            ws_ref[t],
            preferred_element_type=jnp.float32,
        )
    s = s + bs_ref[...]

    # embedding path: (tn, E) @ (E, D) + (1, D)
    f = jnp.dot(emb_ref[...], we_ref[...], preferred_element_type=jnp.float32)
    f = f + be_ref[...]

    p = jax.nn.sigmoid(f)
    q = jnp.tanh(s)
    # p*q + (1-p)*f  ==  f + p*(q - f)   (one fewer multiply)
    o_ref[0, :, :] = (f + p * (q - f)).astype(o_ref.dtype)


def _round_up(a, b):
    return (a + b - 1) // b * b


def temporal_encoder_forward(stock, params, *, tn_max=512):
    """stock: (B, T, N, F); returns (B, N, encoder_dim). Eval mode (dropout=identity)."""
    B, T, N, F = stock.shape
    emb_w = params["embedding"]          # (N, E)
    ws_t = params["ws_t"]                # (T*F, D)  == stock_encoder.weight.T
    bs = params["bs"]                    # (1, D)
    we_t = params["we_t"]                # (E, D)    == embed_encoder.weight.T
    be = params["be"]                    # (1, D)

    E = emb_w.shape[1]
    D = ws_t.shape[1]
    assert ws_t.shape[0] == T * F, "stock_encoder weight does not match T*F"

    # Tile over stocks; pad N (and the embedding table) only if needed.
    N_pad = _round_up(N, 8)
    tn = min(_round_up(tn_max, 8), N_pad)
    N_pad = _round_up(N_pad, tn)
    if N_pad != N:
        stock = jnp.pad(stock, ((0, 0), (0, 0), (0, N_pad - N), (0, 0)))
        emb_w = jnp.pad(emb_w, ((0, N_pad - N), (0, 0)))

    stock_f32 = stock.astype(jnp.float32)
    emb_bf16 = emb_w.astype(jnp.bfloat16)
    ws3_bf16 = ws_t.reshape(T, F, D).astype(jnp.bfloat16)   # row t*F+f -> [t, f, :]
    we_bf16 = we_t.astype(jnp.bfloat16)
    bs_f32 = bs.astype(jnp.float32)
    be_f32 = be.astype(jnp.float32)

    grid = (B, N_pad // tn)

    out = pl.pallas_call(
        temporal_encoder_kernel,
        out_shape=jax.ShapeDtypeStruct((B, N_pad, D), jnp.float32),
        grid_spec=pltpu.PrefetchScalarGridSpec(
            num_scalar_prefetch=0,
            grid=grid,
            in_specs=[
                # raw stock block for (batch b, stock tile j): (1, T, tn, F)
                pl.BlockSpec((1, T, tn, F), lambda b, j: (b, 0, j, 0)),
                # embedding rows for stock tile j only (no B-times broadcast)
                pl.BlockSpec((tn, E), lambda b, j: (j, 0)),
                # resident weights / biases (constant block index -> fetched once)
                pl.BlockSpec((T, F, D), lambda b, j: (0, 0, 0)),
                pl.BlockSpec((1, D), lambda b, j: (0, 0)),
                pl.BlockSpec((E, D), lambda b, j: (0, 0)),
                pl.BlockSpec((1, D), lambda b, j: (0, 0)),
            ],
            out_specs=pl.BlockSpec((1, tn, D), lambda b, j: (b, j, 0)),
        ),
        compiler_params=pltpu.CompilerParams(
            dimension_semantics=("parallel", "parallel"),
            vmem_limit_bytes=32 * 1024 * 1024,  # headroom for large tn on v5e
        ),
    )(stock_f32, emb_bf16, ws3_bf16, bs_f32, we_bf16, be_f32)

    return out[:, :N, :]


def init_params(key, num_stocks, encoder_dim, temporal_embed_dim, input_time, features=9):
    k1, k2, k3, k4, k5 = jax.random.split(key, 5)
    K1 = input_time * features
    params = {
        "embedding": jax.random.normal(k1, (num_stocks, temporal_embed_dim), jnp.float32),
        # store Linear weights already transposed: (in, out)
        "ws_t": jax.random.normal(k2, (K1, encoder_dim), jnp.float32) * (1.0 / jnp.sqrt(K1)),
        "bs": jax.random.normal(k3, (1, encoder_dim), jnp.float32) * 0.01,
        "we_t": jax.random.normal(k4, (temporal_embed_dim, encoder_dim), jnp.float32)
        * (1.0 / jnp.sqrt(temporal_embed_dim)),
        "be": jax.random.normal(k5, (1, encoder_dim), jnp.float32) * 0.01,
    }
    return params


def reference_forward(stock, params):
    """Pure-JAX f32 reference mirroring the PyTorch module (eval mode)."""
    B, T, N, F = stock.shape
    emb = jnp.broadcast_to(
        params["embedding"][None, :, :], (B, N, params["embedding"].shape[1])
    )
    x = jnp.transpose(stock, (0, 2, 1, 3)).reshape(B, N, T * F)
    s = x @ params["ws_t"] + params["bs"]
    f = emb @ params["we_t"] + params["be"]
    p = jax.nn.sigmoid(f)
    q = jnp.tanh(s)
    return p * q + (1 - p) * f


if __name__ == "__main__":
    # Small shapes consistent with the module: F is fixed at 9 by the forward.
    batch = 2
    input_time = 8          # T
    num_stocks = 16         # N
    features = 9            # F (hard-coded by `input_time * 9` in the module)
    temporal_embed_dim = 32
    encoder_dim = 32

    key = jax.random.PRNGKey(0)
    k_in, k_par = jax.random.split(key)
    stock = jax.random.normal(k_in, (batch, input_time, num_stocks, features), jnp.float32)
    params = init_params(k_par, num_stocks, encoder_dim, temporal_embed_dim, input_time, features)

    out = temporal_encoder_forward(stock, params)
    out = jax.block_until_ready(out)

    ref = reference_forward(stock, params)
    assert out.shape == (batch, num_stocks, encoder_dim)
    # bf16 matmul inputs (f32 accumulation) => compare vs f32 reference at ~1e-2 level
    assert jnp.allclose(out, ref, atol=2e-2, rtol=2e-2), "mismatch vs. reference"

    print("KERNEL_OK")
</pallas_src>

<mosaic_0001>
module attributes {stable_mosaic.version = 11 : i64} {
  func.func @temporal_encoder_kernel(%arg0: i32, %arg1: i32, %arg2: memref<1x8x16x9xf32, #tpu.memory_space<vmem>>, %arg3: memref<16x32xbf16, #tpu.memory_space<vmem>>, %arg4: memref<8x9x32xbf16, #tpu.memory_space<vmem>>, %arg5: memref<1x32xf32, #tpu.memory_space<vmem>>, %arg6: memref<32x32xbf16, #tpu.memory_space<vmem>>, %arg7: memref<1x32xf32, #tpu.memory_space<vmem>>, %arg8: memref<1x16x32xf32, #tpu.memory_space<vmem>>) attributes {dimension_semantics = [#tpu.dimension_semantics<parallel>, #tpu.dimension_semantics<parallel>], iteration_bounds = array<i64: 2, 1>, scalar_prefetch = 0 : i64, scratch_operands = 0 : i64, tpu.core_type = #tpu.core_type<tc>, window_params = [{transform_indices = @transform_0, window_bounds = array<i64: 1, 8, 16, 9>}, {transform_indices = @transform_1, window_bounds = array<i64: 16, 32>}, {pipeline_mode = #tpu.pipeline_mode<synchronous>, transform_indices = @transform_2, window_bounds = array<i64: 8, 9, 32>}, {pipeline_mode = #tpu.pipeline_mode<synchronous>, transform_indices = @transform_3, window_bounds = array<i64: 1, 32>}, {pipeline_mode = #tpu.pipeline_mode<synchronous>, transform_indices = @transform_4, window_bounds = array<i64: 32, 32>}, {pipeline_mode = #tpu.pipeline_mode<synchronous>, transform_indices = @transform_5, window_bounds = array<i64: 1, 32>}, {transform_indices = @transform_6, window_bounds = array<i64: 1, 16, 32>}]} {
    %cst = arith.constant 0.000000e+00 : f32
    %0 = vector.broadcast %cst : f32 to vector<16x32xf32>
    %c0 = arith.constant 0 : index
    %c0_0 = arith.constant 0 : index
    %c0_1 = arith.constant 0 : index
    %c0_2 = arith.constant 0 : index
    %1 = vector.load %arg2[%c0, %c0_0, %c0_1, %c0_2] : memref<1x8x16x9xf32, #tpu.memory_space<vmem>>, vector<1x1x16x9xf32>
    %2 = vector.shape_cast %1 : vector<1x1x16x9xf32> to vector<16x9xf32>
    %3 = arith.truncf %2 : vector<16x9xf32> to vector<16x9xbf16>
    %c0_3 = arith.constant 0 : index
    %c0_4 = arith.constant 0 : index
    %c0_5 = arith.constant 0 : index
    %4 = vector.load %arg4[%c0_3, %c0_4, %c0_5] : memref<8x9x32xbf16, #tpu.memory_space<vmem>>, vector<1x9x32xbf16>
    %5 = vector.shape_cast %4 : vector<1x9x32xbf16> to vector<9x32xbf16>
    %cst_6 = arith.constant dense<0.000000e+00> : vector<16x32xf32>
    %6 = tpu.matmul %3, %5, %cst_6 {dimension_numbers = #tpu.dot_dimension_numbers<[1], [0], [0], [1], [0, 0, 1, 1], [], []>} : vector<16x9xbf16>, vector<9x32xbf16>, vector<16x32xf32> -> vector<16x32xf32>
    %7 = arith.addf %0, %6 : vector<16x32xf32>
    %c0_7 = arith.constant 0 : index
    %c1 = arith.constant 1 : index
    %c0_8 = arith.constant 0 : index
    %c0_9 = arith.constant 0 : index
    %8 = vector.load %arg2[%c0_7, %c1, %c0_8, %c0_9] : memref<1x8x16x9xf32, #tpu.memory_space<vmem>>, vector<1x1x16x9xf32>
    %9 = vector.shape_cast %8 : vector<1x1x16x9xf32> to vector<16x9xf32>
    %10 = arith.truncf %9 : vector<16x9xf32> to vector<16x9xbf16>
    %c1_10 = arith.constant 1 : index
    %c0_11 = arith.constant 0 : index
    %c0_12 = arith.constant 0 : index
    %11 = vector.load %arg4[%c1_10, %c0_11, %c0_12] : memref<8x9x32xbf16, #tpu.memory_space<vmem>>, vector<1x9x32xbf16>
    %12 = vector.shape_cast %11 : vector<1x9x32xbf16> to vector<9x32xbf16>
    %cst_13 = arith.constant dense<0.000000e+00> : vector<16x32xf32>
    %13 = tpu.matmul %10, %12, %cst_13 {dimension_numbers = #tpu.dot_dimension_numbers<[1], [0], [0], [1], [0, 0, 1, 1], [], []>} : vector<16x9xbf16>, vector<9x32xbf16>, vector<16x32xf32> -> vector<16x32xf32>
    %14 = arith.addf %7, %13 : vector<16x32xf32>
    %c0_14 = arith.constant 0 : index
    %c2 = arith.constant 2 : index
    %c0_15 = arith.constant 0 : index
    %c0_16 = arith.constant 0 : index
    %15 = vector.load %arg2[%c0_14, %c2, %c0_15, %c0_16] : memref<1x8x16x9xf32, #tpu.memory_space<vmem>>, vector<1x1x16x9xf32>
    %16 = vector.shape_cast %15 : vector<1x1x16x9xf32> to vector<16x9xf32>
    %17 = arith.truncf %16 : vector<16x9xf32> to vector<16x9xbf16>
    %c2_17 = arith.constant 2 : index
    %c0_18 = arith.constant 0 : index
    %c0_19 = arith.constant 0 : index
    %18 = vector.load %arg4[%c2_17, %c0_18, %c0_19] : memref<8x9x32xbf16, #tpu.memory_space<vmem>>, vector<1x9x32xbf16>
    %19 = vector.shape_cast %18 : vector<1x9x32xbf16> to vector<9x32xbf16>
    %cst_20 = arith.constant dense<0.000000e+00> : vector<16x32xf32>
    %20 = tpu.matmul %17, %19, %cst_20 {dimension_numbers = #tpu.dot_dimension_numbers<[1], [0], [0], [1], [0, 0, 1, 1], [], []>} : vector<16x9xbf16>, vector<9x32xbf16>, vector<16x32xf32> -> vector<16x32xf32>
    %21 = arith.addf %14, %20 : vector<16x32xf32>
    %c0_21 = arith.constant 0 : index
    %c3 = arith.constant 3 : index
    %c0_22 = arith.constant 0 : index
    %c0_23 = arith.constant 0 : index
    %22 = vector.load %arg2[%c0_21, %c3, %c0_22, %c0_23] : memref<1x8x16x9xf32, #tpu.memory_space<vmem>>, vector<1x1x16x9xf32>
    %23 = vector.shape_cast %22 : vector<1x1x16x9xf32> to vector<16x9xf32>
    %24 = arith.truncf %23 : vector<16x9xf32> to vector<16x9xbf16>
    %c3_24 = arith.constant 3 : index
    %c0_25 = arith.constant 0 : index
    %c0_26 = arith.constant 0 : index
    %25 = vector.load %arg4[%c3_24, %c0_25, %c0_26] : memref<8x9x32xbf16, #tpu.memory_space<vmem>>, vector<1x9x32xbf16>
    %26 = vector.shape_cast %25 : vector<1x9x32xbf16> to vector<9x32xbf16>
    %cst_27 = arith.constant dense<0.000000e+00> : vector<16x32xf32>
    %27 = tpu.matmul %24, %26, %cst_27 {dimension_numbers = #tpu.dot_dimension_numbers<[1], [0], [0], [1], [0, 0, 1, 1], [], []>} : vector<16x9xbf16>, vector<9x32xbf16>, vector<16x32xf32> -> vector<16x32xf32>
    %28 = arith.addf %21, %27 : vector<16x32xf32>
    %c0_28 = arith.constant 0 : index
    %c4 = arith.constant 4 : index
    %c0_29 = arith.constant 0 : index
    %c0_30 = arith.constant 0 : index
    %29 = vector.load %arg2[%c0_28, %c4, %c0_29, %c0_30] : memref<1x8x16x9xf32, #tpu.memory_space<vmem>>, vector<1x1x16x9xf32>
    %30 = vector.shape_cast %29 : vector<1x1x16x9xf32> to vector<16x9xf32>
    %31 = arith.truncf %30 : vector<16x9xf32> to vector<16x9xbf16>
    %c4_31 = arith.constant 4 : index
    %c0_32 = arith.constant 0 : index
    %c0_33 = arith.constant 0 : index
    %32 = vector.load %arg4[%c4_31, %c0_32, %c0_33] : memref<8x9x32xbf16, #tpu.memory_space<vmem>>, vector<1x9x32xbf16>
    %33 = vector.shape_cast %32 : vector<1x9x32xbf16> to vector<9x32xbf16>
    %cst_34 = arith.constant dense<0.000000e+00> : vector<16x32xf32>
    %34 = tpu.matmul %31, %33, %cst_34 {dimension_numbers = #tpu.dot_dimension_numbers<[1], [0], [0], [1], [0, 0, 1, 1], [], []>} : vector<16x9xbf16>, vector<9x32xbf16>, vector<16x32xf32> -> vector<16x32xf32>
    %35 = arith.addf %28, %34 : vector<16x32xf32>
    %c0_35 = arith.constant 0 : index
    %c5 = arith.constant 5 : index
    %c0_36 = arith.constant 0 : index
    %c0_37 = arith.constant 0 : index
    %36 = vector.load %arg2[%c0_35, %c5, %c0_36, %c0_37] : memref<1x8x16x9xf32, #tpu.memory_space<vmem>>, vector<1x1x16x9xf32>
    %37 = vector.shape_cast %36 : vector<1x1x16x9xf32> to vector<16x9xf32>
    %38 = arith.truncf %37 : vector<16x9xf32> to vector<16x9xbf16>
    %c5_38 = arith.constant 5 : index
    %c0_39 = arith.constant 0 : index
    %c0_40 = arith.constant 0 : index
    %39 = vector.load %arg4[%c5_38, %c0_39, %c0_40] : memref<8x9x32xbf16, #tpu.memory_space<vmem>>, vector<1x9x32xbf16>
    %40 = vector.shape_cast %39 : vector<1x9x32xbf16> to vector<9x32xbf16>
    %cst_41 = arith.constant dense<0.000000e+00> : vector<16x32xf32>
    %41 = tpu.matmul %38, %40, %cst_41 {dimension_numbers = #tpu.dot_dimension_numbers<[1], [0], [0], [1], [0, 0, 1, 1], [], []>} : vector<16x9xbf16>, vector<9x32xbf16>, vector<16x32xf32> -> vector<16x32xf32>
    %42 = arith.addf %35, %41 : vector<16x32xf32>
    %c0_42 = arith.constant 0 : index
    %c6 = arith.constant 6 : index
    %c0_43 = arith.constant 0 : index
    %c0_44 = arith.constant 0 : index
    %43 = vector.load %arg2[%c0_42, %c6, %c0_43, %c0_44] : memref<1x8x16x9xf32, #tpu.memory_space<vmem>>, vector<1x1x16x9xf32>
    %44 = vector.shape_cast %43 : vector<1x1x16x9xf32> to vector<16x9xf32>
    %45 = arith.truncf %44 : vector<16x9xf32> to vector<16x9xbf16>
    %c6_45 = arith.constant 6 : index
    %c0_46 = arith.constant 0 : index
    %c0_47 = arith.constant 0 : index
    %46 = vector.load %arg4[%c6_45, %c0_46, %c0_47] : memref<8x9x32xbf16, #tpu.memory_space<vmem>>, vector<1x9x32xbf16>
    %47 = vector.shape_cast %46 : vector<1x9x32xbf16> to vector<9x32xbf16>
    %cst_48 = arith.constant dense<0.000000e+00> : vector<16x32xf32>
    %48 = tpu.matmul %45, %47, %cst_48 {dimension_numbers = #tpu.dot_dimension_numbers<[1], [0], [0], [1], [0, 0, 1, 1], [], []>} : vector<16x9xbf16>, vector<9x32xbf16>, vector<16x32xf32> -> vector<16x32xf32>
    %49 = arith.addf %42, %48 : vector<16x32xf32>
    %c0_49 = arith.constant 0 : index
    %c7 = arith.constant 7 : index
    %c0_50 = arith.constant 0 : index
    %c0_51 = arith.constant 0 : index
    %50 = vector.load %arg2[%c0_49, %c7, %c0_50, %c0_51] : memref<1x8x16x9xf32, #tpu.memory_space<vmem>>, vector<1x1x16x9xf32>
    %51 = vector.shape_cast %50 : vector<1x1x16x9xf32> to vector<16x9xf32>
    %52 = arith.truncf %51 : vector<16x9xf32> to vector<16x9xbf16>
    %c7_52 = arith.constant 7 : index
    %c0_53 = arith.constant 0 : index
    %c0_54 = arith.constant 0 : index
    %53 = vector.load %arg4[%c7_52, %c0_53, %c0_54] : memref<8x9x32xbf16, #tpu.memory_space<vmem>>, vector<1x9x32xbf16>
    %54 = vector.shape_cast %53 : vector<1x9x32xbf16> to vector<9x32xbf16>
    %cst_55 = arith.constant dense<0.000000e+00> : vector<16x32xf32>
    %55 = tpu.matmul %52, %54, %cst_55 {dimension_numbers = #tpu.dot_dimension_numbers<[1], [0], [0], [1], [0, 0, 1, 1], [], []>} : vector<16x9xbf16>, vector<9x32xbf16>, vector<16x32xf32> -> vector<16x32xf32>
    %56 = arith.addf %49, %55 : vector<16x32xf32>
    %c0_56 = arith.constant 0 : index
    %c0_57 = arith.constant 0 : index
    %57 = vector.load %arg5[%c0_56, %c0_57] : memref<1x32xf32, #tpu.memory_space<vmem>>, vector<1x32xf32>
    %58 = vector.broadcast %57 : vector<1x32xf32> to vector<16x32xf32>
    %59 = arith.addf %56, %58 : vector<16x32xf32>
    %c0_58 = arith.constant 0 : index
    %c0_59 = arith.constant 0 : index
    %60 = vector.load %arg3[%c0_58, %c0_59] : memref<16x32xbf16, #tpu.memory_space<vmem>>, vector<16x32xbf16>
    %c0_60 = arith.constant 0 : index
    %c0_61 = arith.constant 0 : index
    %61 = vector.load %arg6[%c0_60, %c0_61] : memref<32x32xbf16, #tpu.memory_space<vmem>>, vector<32x32xbf16>
    %cst_62 = arith.constant dense<0.000000e+00> : vector<16x32xf32>
    %62 = tpu.matmul %60, %61, %cst_62 {dimension_numbers = #tpu.dot_dimension_numbers<[1], [0], [0], [1], [0, 0, 1, 1], [], []>} : vector<16x32xbf16>, vector<32x32xbf16>, vector<16x32xf32> -> vector<16x32xf32>
    %c0_63 = arith.constant 0 : index
    %c0_64 = arith.constant 0 : index
    %63 = vector.load %arg7[%c0_63, %c0_64] : memref<1x32xf32, #tpu.memory_space<vmem>>, vector<1x32xf32>
    %64 = vector.broadcast %63 : vector<1x32xf32> to vector<16x32xf32>
    %65 = arith.addf %62, %64 : vector<16x32xf32>
    %66 = arith.negf %65 : vector<16x32xf32>
    %67 = math.exp %66 : vector<16x32xf32>
    %cst_65 = arith.constant 1.000000e+00 : f32
    %68 = vector.broadcast %cst_65 : f32 to vector<16x32xf32>
    %69 = arith.addf %68, %67 : vector<16x32xf32>
    %70 = arith.divf %68, %69 : vector<16x32xf32>
    %71 = math.tanh %59 : vector<16x32xf32>
    %72 = arith.subf %71, %65 : vector<16x32xf32>
    %73 = arith.mulf %70, %72 : vector<16x32xf32>
    %74 = arith.addf %65, %73 : vector<16x32xf32>
    %c0_66 = arith.constant 0 : index
    %c0_67 = arith.constant 0 : index
    %c0_68 = arith.constant 0 : index
    %75 = vector.load %arg8[%c0_66, %c0_67, %c0_68] : memref<1x16x32xf32, #tpu.memory_space<vmem>>, vector<1x16x32xf32>
    %76 = vector.shape_cast %75 : vector<1x16x32xf32> to vector<16x32xf32>
    %77 = vector.shape_cast %74 : vector<16x32xf32> to vector<1x16x32xf32>
    tpu.vector_store %arg8[%c0_66, %c0_67, %c0_68], %77 {strides = array<i32>} : memref<1x16x32xf32, #tpu.memory_space<vmem>>, vector<1x16x32xf32>,
    return
  }
  func.func @transform_0(%arg0: i32, %arg1: i32) -> (i32, i32, i32, i32) {
    %c0_i32 = arith.constant 0 : i32
    %c0_i32_0 = arith.constant 0 : i32
    %c0_i32_1 = arith.constant 0 : i32
    return %arg0, %c0_i32, %arg1, %c0_i32_0 : i32, i32, i32, i32
  }
  func.func @transform_1(%arg0: i32, %arg1: i32) -> (i32, i32) {
    %c0_i32 = arith.constant 0 : i32
    %c0_i32_0 = arith.constant 0 : i32
    return %arg1, %c0_i32 : i32, i32
  }
  func.func @transform_2(%arg0: i32, %arg1: i32) -> (i32, i32, i32) {
    %c0_i32 = arith.constant 0 : i32
    %c0_i32_0 = arith.constant 0 : i32
    %c0_i32_1 = arith.constant 0 : i32
    %c0_i32_2 = arith.constant 0 : i32
    return %c0_i32, %c0_i32_0, %c0_i32_1 : i32, i32, i32
  }
  func.func @transform_3(%arg0: i32, %arg1: i32) -> (i32, i32) {
    %c0_i32 = arith.constant 0 : i32
    %c0_i32_0 = arith.constant 0 : i32
    %c0_i32_1 = arith.constant 0 : i32
    return %c0_i32, %c0_i32_0 : i32, i32
  }
  func.func @transform_4(%arg0: i32, %arg1: i32) -> (i32, i32) {
    %c0_i32 = arith.constant 0 : i32
    %c0_i32_0 = arith.constant 0 : i32
    %c0_i32_1 = arith.constant 0 : i32
    return %c0_i32, %c0_i32_0 : i32, i32
  }
  func.func @transform_5(%arg0: i32, %arg1: i32) -> (i32, i32) {
    %c0_i32 = arith.constant 0 : i32
    %c0_i32_0 = arith.constant 0 : i32
    %c0_i32_1 = arith.constant 0 : i32
    return %c0_i32, %c0_i32_0 : i32, i32
  }
  func.func @transform_6(%arg0: i32, %arg1: i32) -> (i32, i32, i32) {
    %c0_i32 = arith.constant 0 : i32
    %c0_i32_0 = arith.constant 0 : i32
    return %arg0, %arg1, %c0_i32 : i32, i32, i32
  }
}

</mosaic_0001>

<bundles_post_ra>
// kernel: tpu_custom_call.1
= control target key start
LH: loop header
LB: loop body
LE: loop exit
PB: predicated region body
PF: predicated region fallthrough
CT: control target
= control target key end

     0   :  { %11 = vsyncpa [#allocation3], 0  ;;  %s1575_s0 = inlined_call_operand.vmem [shape: f32[2,8,16,9], index: 0, kind: input, shape index: {}]   ;;  %s1576_s1 = inlined_call_operand.vmem [shape: bf16[16,32], index: 1, kind: input, shape index: {}]   ;;  %s1577_s2 = inlined_call_operand.vmem [shape: bf16[8,9,32], index: 2, kind: input, shape index: {}]   ;;  %s1578_s3 = inlined_call_operand.vmem [shape: f32[1,32], index: 3, kind: input, shape index: {}]   ;;  %s1579_s4 = inlined_call_operand.vmem [shape: bf16[32,32], index: 4, kind: input, shape index: {}]   ;;  %s1580_s5 = inlined_call_operand.vmem [shape: f32[1,32], index: 5, kind: input, shape index: {}]   ;;  %s1581_s6 = inlined_call_operand.hbm [shape: f32[2,16,32], index: 6, kind: output, shape index: {}]  }
   0x1   :  { %13 = vsyncpa [#allocation3 + $0x1], 0  ;;  %s1354_s21 = smov 0   ;;  %s1356_s22 = smov 0  }
   0x2   :  { %s1358_s23 = smov 0   ;;  %s1360_s24 = smov 0  }
   0x3   :  { %s1362_s25 = smov 0   ;;  %s1364_s26 = smov 0  }
   0x4 LB: > { %s1007_s27 = sadd.s32 4294967295, %s1311_s26   ;;  %s1008_s28 = sadd.s32 4294967294, %s1311_s26   ;;  %s1311_s26 = sphi %s1364_s26, %s19_s26   ;;  %s1307_s25 = sphi %s1362_s25, %s1588_s25   ;;  %s1303_s24 = sphi %s1360_s24, %s1587_s24   ;;  %s1299_s23 = sphi %s1358_s23, %s1586_s23   ;;  %s1295_s22 = sphi %s1356_s22, %s1585_s22   ;;  %s1291_s21 = sphi %s1354_s21, %s1584_s21  }
   0x5   : > { %s31_s29 = sadd.s32 1, %s1307_s25  ;;  %s178_s30 = sadd.s32 1, %s1299_s23 }
   0x6   : > { %p33_p0 = scmp.ge.s32.totalorder %s31_s29, 2  ;;  %p188_p1 = scmp.ne.s32.totalorder %s1299_s23, %s1295_s22 }
   0x7   : > { %p189_p2 = scmp.eq.s32.totalorder %s1007_s27, 1  ;;  %p194_p3 = scmp.ne.s32.totalorder %s1295_s22, %s1291_s21 }
   0x8   : > { %s1590_s29 = smov (%p33_p0, %s31_s29), 0  ;;  %p195_p5 = scmp.eq.s32.totalorder %s1008_s28, 1 }
   0x9   : > { %p1394_p4 = por %p189_p2, %p188_p1  ;;  %s173_s8 = ssub.s32 %s1307_s25, %s1590_s29 }
   0xa   : > { %p1012_p6 = scmp.ge.s32.totalorder %s1311_s26, 1  ;;  %p176_p7 = scmp.eq.s32.totalorder %s173_s8, 0 }
   0xb   : > { %p1401_p8 = por %p195_p5, %p194_p3  ;;  %p247_p9 = scmp.lt.s32.totalorder %s1311_s26, 3 }
   0xc   : > { %s1407_s10 = scalar_select %p176_p7, %s1299_s23, %s178_s30  }
   0xd   : > { %p248_p10 = pnand %p1012_p6, %p247_p9 }
   0xe   : > { %vm325_vm0 = vcmask (!%p248_p10), 1043456   ;;  %v1313_v0 = vmov (!%p248_p10), 0.0   ;;  %v1210_v1 = vld [vmem:[%s1577_s2 + $0x8] sm:$0x1f] (!%p248_p10)   ;;  %vm326_vm1 = vcmask (!%p248_p10), 1044480   ;;  %v1314_v2 = vmov (!%p248_p10), 65535  }
   0xf   : > { %251 = sbr.rel (%p248_p10) target bundleno = 322 (0x142), region = 44  ;;  %1094 = vmatprep.subr.bf16.mxu0 (!%p248_p10), %v1313_v0  ;;  %1100 = vmatprep.subr.bf16.mxu1 (!%p248_p10), %v1313_v0  ;;  %v327_v3 = vsel (!%p248_p10), %vm325_vm0, 4294967295, %v1314_v2  ;;  %v1211_v4 = vld [vmem:[%s1577_s2] sm:$0x1f] (!%p248_p10)   ;;  %vm1315_vm2 = vmmov (!%p248_p10), 0   ;;  %p287_p11 = scmp.lt.s32.totalorder (!%p248_p10), %s1303_s24, 1 }
  0x10   : > { %v1417_v5 = vsel (!%p248_p10), %vm326_vm1, %v327_v3, 0  ;;  %1096 = vmatprep.mubr.msk.bf16.mxu0 (!%p248_p10), %vm1315_vm2, %v1313_v0  ;;  %1102 = vmatprep.mubr.msk.bf16.mxu1 (!%p248_p10), %vm1315_vm2, %v1313_v0  ;;  %v1212_v8 = vld [vmem:[%s1577_s2 + $0x10] sm:$0x1f] (!%p248_p10)   ;;  %v1213_v9 = vld [vmem:[%s1577_s2 + $0x18] sm:$0x1f] (!%p248_p10)   ;;  %vm321_vm3 = vcmask (!%p248_p10), 72704  }
  0x11   : > { %v330_v6 = vand.u32 (!%p248_p10), %v1210_v1, %v1417_v5  ;;  %v382_v7 = vand.u32 (!%p248_p10), %v1211_v4, %v1417_v5  ;;  %v441_v13 = vand.u32 (!%p248_p10), %v1212_v8, %v1417_v5  ;;  %v502_v16 = vand.u32 (!%p248_p10), %v1213_v9, %v1417_v5  ;;  %v1214_v19 = vld [vmem:[%s1577_s2 + $0x20] sm:$0x1f] (!%p248_p10)   ;;  %v1215_v23 = vld [vmem:[%s1577_s2 + $0x28] sm:$0x1f] (!%p248_p10)   ;;  %v1216_v30 = vld [vmem:[%s1577_s2 + $0x30] sm:$0x1f] (!%p248_p10)  }
  0x12   : > { %v563_v25 = vand.u32 (!%p248_p10), %v1214_v19, %v1417_v5  ;;  %v624_v27 = vand.u32 (!%p248_p10), %v1215_v23, %v1417_v5  ;;  %v1217_v33 = vld [vmem:[%s1577_s2 + $0x38] sm:$0x1f] (!%p248_p10)   ;;  %v685_v35 = vand.u32 (!%p248_p10), %v1216_v30, %v1417_v5  ;;  %v1218_v43 = vld [vmem:[%s1579_s4] sm:$0xff] (!%p248_p10)   ;;  %v1219_v45 = vld [vmem:[%s1579_s4 + $0x8] sm:$0xff] (!%p248_p10)   ;;  %vm830_vm4 = vcmask (!%p248_p10), 261120   ;;  %s283_s14 = sand.u32 (!%p248_p10), 1, %s1295_s22  }
  0x13   : > { %1095 = vmatpush3.bf16.msra.mxu0 (!%p248_p10), %v330_v6  ;;  %1101 = vmatpush3.bf16.msra.mxu1 (!%p248_p10), %v382_v7  ;;  %v746_v37 = vand.u32 (!%p248_p10), %v1217_v33, %v1417_v5  ;;  %v1220_v46 = vld [vmem:[%s1576_s1] sm:$0xff] (!%p248_p10)   ;;  %s1074_s16 = sshll.u32 (!%p248_p10), %s1303_s24, 8 }
  0x14   : > { %1106 = vmatprep.subr.bf16.mxu0 (!%p248_p10), %v1313_v0  ;;  %1112 = vmatprep.subr.bf16.mxu1 (!%p248_p10), %v1313_v0  ;;  %s1523_s27 = scalar_lea.hbm (!%p248_p10), %s1581_s6, %s1074_s16 }
  0x16   : > { %s288_s15 = scalar_select %p287_p11, %s1303_s24, 1 }
  0x17   : > { %s1529_s24 = scalar_lea.sflag [#allocation3], %s283_s14 }
  0x18   : > { %s1073_s20 = sshll.u32 %s288_s15, 7  ;;  %s1013_s15 = sshll.u32 %s283_s14, 4 }
  0x19   : > { %s1438_s30 = scalar_lea.vmem %s1575_s0, %s1073_s20  ;;  %s285_s17 = scalar_lea.vmem [#allocation2], %s1013_s15 }
  0x1a   : > { %v1016_v10 = vld [vmem:[%s1438_s30 + $0x10] sm:$0xff]  ;;  %v1017_v11 = vld [vmem:[%s1438_s30 + $0x18] sm:$0xff]  ;;  %v304_v12 = vld [vmem:[%s1438_s30] sm:$0xff]  ;;  %s913_s18 = sshll.u32 %s285_s17, 4  ;;  %s1525_s18 = int_to_ptr.vmem [resolvable:$true] %s913_s18 }
  0x1b   : > { %v312_v14 = vpack.c.bf16 %v1017_v11, %v1016_v10  ;;  %v305_v15 = vld [vmem:[%s1438_s30 + $0x8] sm:$0xff]  ;;  %v1024_v18 = vld [vmem:[%s1438_s30 + $0x20] sm:$0xff]  ;;  %v1030_v21 = vld [vmem:[%s1438_s30 + $0x30] sm:$0xff]  ;;  %s1233_s28 = scalar_lea.vmem %s1525_s18, 256 }
  0x1c   : > { %v306_v17 = vpack.c.bf16 %v305_v15, %v304_v12  ;;  %v1025_v20 = vld [vmem:[%s1438_s30 + $0x28] sm:$0xff]  ;;  %v1031_v22 = vld [vmem:[%s1438_s30 + $0x38] sm:$0xff]  ;;  %v1036_v28 = vld [vmem:[%s1438_s30 + $0x40] sm:$0xff]  ;;  %p1234_p12 = scmp.ne.s32.totalorder %s1525_s18, %s1233_s28 }
  0x1d   : > { %1097 = vmatmul.mubr.msk.bf16.vlgmr.msra.gmra.mrb[0].mxu0 %vm321_vm3, %v312_v14  ;;  %v428_v24 = vpack.c.bf16 %v1025_v20, %v1024_v18  ;;  %v489_v26 = vpack.c.bf16 %v1031_v22, %v1030_v21  ;;  %v1037_v29 = vld [vmem:[%s1438_s30 + $0x48] sm:$0xff]  ;;  %v1042_v31 = vld [vmem:[%s1438_s30 + $0x50] sm:$0xff]  ;;  %v1043_v32 = vld [vmem:[%s1438_s30 + $0x58] sm:$0xff] }
  0x1e   : > { %1103 = vmatmul.mubr.msk.bf16.vlgmr.msra.gmra.mrb[0].mxu1 %vm321_vm3, %v306_v17  ;;  %1107 = vmatpush3.bf16.msra.mxu0 %v441_v13  ;;  %v550_v34 = vpack.c.bf16 %v1037_v29, %v1036_v28  ;;  %v611_v36 = vpack.c.bf16 %v1043_v32, %v1042_v31  ;;  %v1048_v38 = vld [vmem:[%s1438_s30 + $0x60] sm:$0xff]  ;;  %v1049_v39 = vld [vmem:[%s1438_s30 + $0x68] sm:$0xff]  ;;  %v1054_v40 = vld [vmem:[%s1438_s30 + $0x70] sm:$0xff]  ;;  %p1235_p13 = pnand %p1234_p12, %p1394_p4 }
  0x1f   : > { %1108 = vmatprep.mubr.msk.bf16.mxu0 %vm1315_vm2, %v1313_v0  ;;  %1113 = vmatpush3.bf16.msra.mxu1 %v502_v16  ;;  %v1055_v41 = vld [vmem:[%s1438_s30 + $0x78] sm:$0xff]  ;;  %v672_v42 = vpack.c.bf16 %v1049_v39, %v1048_v38  ;;  %v1060_v22 = vld [vmem:[%s1578_s3] ss:$0 sm:$0xff]  ;;  %s1316_s30 = smov [#allocation2]  }
  0x20   : > { %1118 = vmatprep.subr.bf16.mxu0 %v1313_v0  ;;  %1114 = vmatprep.mubr.msk.bf16.mxu1 %vm1315_vm2, %v1313_v0  ;;  %v733_v44 = vpack.c.bf16 %v1055_v41, %v1054_v40  ;;  %v1061_v31 = vld [vmem:[%s1580_s5] ss:$0 sm:$0xff]  ;;  %p1236_p0 = pneg %p1235_p13  ;;  %s1237_s8 = sshll.u32 %s1316_s30, 4  ;;  %s1238_s8 = int_to_ptr.vmem [resolvable:$false] %s1237_s8 }
  0x21   : > { %1124 = vmatprep.subr.bf16.mxu1 %v1313_v0  ;;  %s1239_s11 = scalar_lea.vmem %s1238_s8, 512  ;;  %p1240_p1 = scmp.lt.s32.totalorder %s1525_s18, %s1238_s8 }
  0x22   : > { %p1241_p2 = scmp.lt.s32.totalorder %s1239_s11, %s1233_s28 }
  0x24   : > { %p1242_p3 = por %p1241_p2, %p1240_p1 }
  0x25   : > { %1109 = vmatmul.mubr.msk.bf16.vlgmr.msra.gmra.mrb[4].mxu0 %vm321_vm3, %v428_v24 }
  0x26   : > { %1119 = vmatpush3.bf16.msra.mxu0 %v563_v25  ;;  %1115 = vmatmul.mubr.msk.bf16.vlgmr.msra.gmra.mrb[4].mxu1 %vm321_vm3, %v489_v26  ;;  %p1243_p5 = pnand %p1242_p3, %p1236_p0 }
  0x27   : > { %1120 = vmatprep.mubr.msk.bf16.mxu0 %vm1315_vm2, %v1313_v0  ;;  %1125 = vmatpush3.bf16.msra.mxu1 %v624_v27 }
  0x28   : > { %1130 = vmatprep.subr.bf16.mxu0 %v1313_v0  ;;  %1126 = vmatprep.mubr.msk.bf16.mxu1 %vm1315_vm2, %v1313_v0 }
  0x29   : > { %1136 = vmatprep.subr.bf16.mxu1 %v1313_v0 }
  0x2d   : > { %1121 = vmatmul.mubr.msk.bf16.vlgmr.msra.gmra.mrb[8].mxu0 %vm321_vm3, %v550_v34 }
  0x2e   : > { %1131 = vmatpush3.bf16.msra.mxu0 %v685_v35  ;;  %1127 = vmatmul.mubr.msk.bf16.vlgmr.msra.gmra.mrb[8].mxu1 %vm321_vm3, %v611_v36 }
  0x2f   : > { %1132 = vmatprep.mubr.msk.bf16.mxu0 %vm1315_vm2, %v1313_v0  ;;  %1137 = vmatpush3.bf16.msra.mxu1 %v746_v37 }
  0x30   : > { %1142 = vmatprep.subr.bf16.mxu0 %v1313_v0  ;;  %1138 = vmatprep.mubr.msk.bf16.mxu1 %vm1315_vm2, %v1313_v0 }
  0x35   : > { %1133 = vmatmul.mubr.msk.bf16.vlgmr.msra.gmra.mrb[12].mxu0 %vm321_vm3, %v672_v42 }
  0x36   : > { %1143 = vmatpush3.bf16.msra.mxu0 %v1218_v43  ;;  %1139 = vmatmul.mubr.msk.bf16.vlgmr.msra.gmra.mrb[12].mxu1 %vm321_vm3, %v733_v44 }
  0x37   : > { %1144 = vmatprep.subr.bf16.mxu0 %v1313_v0  ;;  %1146 = vmatprep.mubr.msk.bf16.mxu0 %vm1315_vm2, %v1313_v0 }
  0x3a   : > { %1145 = vmatpush3.bf16.msra.mxu0 %v1219_v45 }
  0x3d   : > { %1147 = vmatmul.mubr.msk.bf16.vlgmr.msra.gmra.mrb[16].mxu0 %vm830_vm4, %v1220_v46 }
  0xf0   : > { %v366_v47 = vpop.f32.mrb[0].mxu0 }
  0xf1   : > { %v418_v48 = vpop.f32.mrb[0].mxu1  ;;  %v1098_v49 = vpop.f32.mrb[1].mxu0 }
  0xf2   : > { %v419_v50 = vadd.f32 %v418_v48, %v366_v47  ;;  %v1104_v51 = vpop.f32.mrb[1].mxu1  ;;  %v369_v52 = vpop.f32.mrb[2].mxu0 }
  0xf3   : > { %v421_v53 = vpop.f32.mrb[2].mxu1  ;;  %v1099_v54 = vpop.f32.mrb[3].mxu0 }
  0xf4   : > { %v422_v55 = vadd.f32 %v421_v53, %v369_v52  ;;  %v1105_v56 = vpop.f32.mrb[3].mxu1 }
  0xf8   : > { %v477_v57 = vpop.f32.mrb[4].mxu0 }
  0xf9   : > { %v484_v58 = vadd.f32 %v477_v57, %v419_v50  ;;  %v1110_v59 = vpop.f32.mrb[5].mxu0  ;;  %v538_v60 = vpop.f32.mrb[4].mxu1 }
  0xfa   : > { %v480_v61 = vpop.f32.mrb[6].mxu0  ;;  %v1116_v62 = vpop.f32.mrb[5].mxu1 }
  0xfb   : > { %v485_v63 = vadd.f32 %v480_v61, %v422_v55  ;;  %v545_v0 = vadd.f32 %v538_v60, %v484_v58  ;;  %v1111_v1 = vpop.f32.mrb[7].mxu0  ;;  %v541_v2 = vpop.f32.mrb[6].mxu1 }
  0xfc   : > { %v1117_v3 = vpop.f32.mrb[7].mxu1 }
  0xfd   : > { %v546_v4 = vadd.f32 %v541_v2, %v485_v63 }
 0x100   : > { %v599_v5 = vpop.f32.mrb[8].mxu0 }
 0x101   : > { %v606_v6 = vadd.f32 %v599_v5, %v545_v0  ;;  %v1122_v7 = vpop.f32.mrb[9].mxu0  ;;  %v660_v8 = vpop.f32.mrb[8].mxu1 }
 0x102   : > { %v602_v9 = vpop.f32.mrb[10].mxu0  ;;  %v1128_v10 = vpop.f32.mrb[9].mxu1 }
 0x103   : > { %v607_v11 = vadd.f32 %v602_v9, %v546_v4  ;;  %v667_v12 = vadd.f32 %v660_v8, %v606_v6  ;;  %v1123_v13 = vpop.f32.mrb[11].mxu0  ;;  %v663_v14 = vpop.f32.mrb[10].mxu1 }
 0x104   : > { %v1129_v15 = vpop.f32.mrb[11].mxu1 }
 0x105   : > { %v668_v16 = vadd.f32 %v663_v14, %v607_v11 }
 0x108   : > { %v721_v17 = vpop.f32.mrb[12].mxu0 }
 0x109   : > { %v728_v18 = vadd.f32 %v721_v17, %v667_v12  ;;  %v1134_v19 = vpop.f32.mrb[13].mxu0  ;;  %v782_v20 = vpop.f32.mrb[12].mxu1 }
 0x10a   : > { %v724_v21 = vpop.f32.mrb[14].mxu0  ;;  %v1140_v23 = vpop.f32.mrb[13].mxu1 }
 0x10b   : > { %v729_v24 = vadd.f32 %v724_v21, %v668_v16  ;;  %v789_v25 = vadd.f32 %v782_v20, %v728_v18  ;;  %v1135_v26 = vpop.f32.mrb[15].mxu0  ;;  %v785_v27 = vpop.f32.mrb[14].mxu1 }
 0x10c   : > { %v1141_v28 = vpop.f32.mrb[15].mxu1 }
 0x10d   : > { %v798_v29 = vadd.f32 %v1060_v22, %v789_v25  ;;  %v790_v30 = vadd.f32 %v785_v27, %v729_v24 }
 0x10f   : > { %1221 = vtanh.f32 %v798_v29  ;;  %v799_v32 = vadd.f32 %v1060_v22, %v790_v30 }
 0x110   : > { %v868_v33 = vpop.f32.mrb[16].mxu0 }
 0x111   : > { %1223 = vtanh.f32 %v799_v32  ;;  %v869_v34 = vadd.f32 %v1061_v31, %v868_v33  ;;  %v1148_v35 = vpop.f32.mrb[17].mxu0 }
 0x112   : > { %v871_v36 = vpop.f32.mrb[18].mxu0 }
 0x113   : > { %v1066_v37 = vmul.f32 -1.442695, %v869_v34  ;;  %v872_v38 = vadd.f32 %v1061_v31, %v871_v36  ;;  %v1149_v39 = vpop.f32.mrb[19].mxu0 }
 0x115   : > { %1225 = vpow2.f32 %v1066_v37  ;;  %v1067_v40 = vmul.f32 -1.442695, %v872_v38 }
 0x117   : > { %1227 = vpow2.f32 %v1067_v40 }
 0x119   : > { %v1222_v41 = vpop.eup %1221 }
 0x11a   : > { %v889_v42 = vsub.f32 %v1222_v41, %v869_v34 }
 0x11b   : > { %v1224_v43 = vpop.eup %1223 }
 0x11c   : > { %v890_v44 = vsub.f32 %v1224_v43, %v872_v38 }
 0x11f   : > { %v1226_v45 = vpop.eup %1225 }
 0x120   : > { %v881_v46 = vadd.f32 1.0, %v1226_v45 }
 0x121   : > { %v1228_v47 = vpop.eup %1227 }
 0x122   : > { %1229 = vrcp.f32 %v881_v46  ;;  %v882_v48 = vadd.f32 1.0, %v1228_v47 }
 0x124   : > { %1231 = vrcp.f32 %v882_v48 }
 0x12c   : > { %v1230_v49 = vpop.eup %1229 }
 0x12d   : > { %v891_v50 = vmul.f32 %v1230_v49, %v889_v42 }
 0x12e   : > { %v1232_v51 = vpop.eup %1231 }
 0x12f   : > { %v893_v52 = vadd.f32 %v891_v50, %v869_v34  ;;  %v892_v53 = vmul.f32 %v1232_v51, %v890_v44 }
 0x131   : > { %895 = vst.msk [vmem:[%s285_s17] sm:$0xff] %vm830_vm4, %v893_v52  ;;  %v894_v54 = vadd.f32 %v892_v53, %v872_v38 }
 0x133   : > { %896 = vst.msk [vmem:[%s285_s17 + $0x8] sm:$0xff] %vm830_vm4, %v894_v54 }
 0x134   : > { %1246 = shalt.err (!%p1243_p5)
}
 0x135   : > { %s1247_s12 = scalar_lea.hbm %s1523_s27, 256  ;;  %s1251_s15 = scalar_lea.hbm %s1581_s6, 512 }
 0x136   : > { %p1248_p6 = scmp.ne.s32.totalorder %s1523_s27, %s1247_s12  ;;  %p1252_p10 = scmp.lt.u32.totalorder %s1523_s27, %s1581_s6 }
 0x137   : > { %p1253_p11 = scmp.lt.u32.totalorder %s1251_s15, %s1247_s12  ;;  %p1255_p13 = scmp.lt.u32.totalorder %s1247_s12, %s1523_s27 }
 0x138   : > { %p1249_p7 = pnand %p1248_p6, %p1394_p4 }
 0x139   : > { %p1254_p12 = por %p1253_p11, %p1252_p10 }
 0x13a   : > { %p1250_p9 = pneg %p1249_p7 }
 0x13b   : > { %p1256_p0 = por %p1255_p13, %p1254_p12 }
 0x13d   : > { %p1257_p1 = pnand %p1256_p0, %p1250_p9 }
 0x13f   : > { %1260 = shalt.err (!%p1257_p1)
}
 0x140   : > { %s1317_s19 = smov 128   ;;  %s1318_s20 = smov 8  }
 0x141   : > { %1150 = dma.vmem_to_hbm [thread:$0]  (%p1394_p4), %s1525_s18, 256, %s1523_s27, %s1529_s24, %s1317_s19, %s1317_s19, %s1318_s20  }
 0x142 PF: > { %p1156_p2 = scmp.ge.s32.totalorder %s1311_s26, 2  ;;  %s928_s28 = sand.u32 1, %s1291_s21  }
 0x143   : > { %s929_s30 = scalar_lea.sflag [#allocation3], %s928_s28 }
 0x144   : > { %p1153_p3 = pnand %p1156_p2, %p1401_p8 }
 0x146   : > { %1286 = dma.done.wait (!%p1153_p3), %s929_s30, 256  }
 0x147   : > { %1288 = vsyncadd (!%p1153_p3), %s929_s30, 4294967040  ;;  %s19_s26 = sadd.s32 1, %s1311_s26   ;;  %s1584_s21 = smov %s1295_s22 }
 0x148   : > { %p16_p5 = scmp.ge.s32.totalorder %s19_s26, 4   ;;  %s1585_s22 = smov %s1299_s23 }
 0x149   : > { %s1586_s23 = smov %s1407_s10  ;;  %s1587_s24 = smov %s1307_s25 }
 0x14a   : > { %s1588_s25 = smov %s1590_s29  ;;  %18 = sbr.rel (!%p16_p5) target bundleno = 4 (0x4), region = 96 }
 0x151   :  { %934 = vsyncpa [#allocation3], 1 }
 0x152   :  { %936 = vsyncpa [#allocation3 + $0x1], 1 }

</bundles_post_ra>
